<compile_context>
chip_gen: v7x
topology: tpu7x:2x2x1
jax: 0.10.0
libtpu: 0.0.40
codegen_flags: <defaults>
</compile_context>

<pallas_src>
import jax
import jax.numpy as jnp
from jax.experimental import pallas as pl
from jax.experimental.pallas import tpu as pltpu


def _attention_gate_kernel(g_ref, x_ref, wg_ref, wx_ref, b_ref, wp_ref,
                           bp_ref, out_ref):
    """One (batch, spatial-tile) grid step.

    g_ref  : (F_g, T)      gating-signal tile (channels on sublanes, pixels on lanes)
    x_ref  : (F_l, T)      skip-connection tile
    wg_ref : (F_int, F_g)  W_g^T, BN folded in
    wx_ref : (F_int, F_l)  W_x^T, BN folded in
    b_ref  : (F_int, 1)    fused bias b_g + b_x
    wp_ref : (1, F_int) or (F_int, 1)  psi weights (shape picks the path)
    bp_ref : (1,) SMEM     psi bias (scalar)
    out_ref: (F_l, T)
    """
    x = x_ref[...]

    # W_g(g) + W_x(x): two skinny MXU matmuls accumulated in f32.
    # Activations go to the MXU in their native dtype (no explicit upcast).
    h = jnp.dot(wg_ref[...], g_ref[...], preferred_element_type=jnp.float32)
    h = h + jnp.dot(wx_ref[...], x, preferred_element_type=jnp.float32)
    h = jnp.maximum(h + b_ref[...], 0.0)                     # relu, (F_int, T) f32

    if wp_ref.shape[0] == 1:
        # Large F_int: (1, F_int) @ (F_int, T) rides the otherwise idle MXU,
        # avoiding the (F_int, T) product temporary and the XLU reduce.
        p = jnp.dot(wp_ref[...], h, preferred_element_type=jnp.float32)
    else:
        # Tiny F_int: exact f32 multiply + sublane reduction.
        p = jnp.sum(h * wp_ref[...], axis=0, keepdims=True)
    p = jax.nn.sigmoid(p + bp_ref[0])                        # (1, T), EUP

    # Gate the skip connection in the ACTIVATION dtype: cast only the (1, T)
    # psi row, never the (F_l, T) x tile (largest elementwise tensor here).
    out_ref[...] = (x * p.astype(x.dtype)).astype(out_ref.dtype)


def _vmem_budgets():
    """(streaming_budget_bytes, vmem_limit_bytes), TPU-generation aware."""
    try:
        cap = pltpu.get_tpu_info().vmem_capacity_bytes
    except Exception:
        cap = 64 * 1024 * 1024                 # conservative: v7x per-TC VMEM
    if cap >= 96 * 1024 * 1024:                # v5e / v6e: 128 MiB physical
        return 32 * 1024 * 1024, 64 * 1024 * 1024
    # v7x: 64 MiB per TC, 32 MiB scoped default -> keep the tight budget.
    return 12 * 1024 * 1024, 32 * 1024 * 1024


def _pick_tile_hw(hw, batch, bytes_per_column, budget_bytes, min_steps=8):
    """Largest lane-dense (128-multiple) spatial tile whose double-buffered
    streaming slabs fit the budget, shrunk so the grid has >= min_steps total
    steps (>= ~4 per TensorCore on v7x).  The last grid block may be partial
    (grid uses cdiv); psi/gating are strictly per-column so padded lanes in a
    partial block never mix into real columns."""
    hw_padded = -(-hw // 128) * 128
    cap = max(128, (budget_bytes // max(bytes_per_column, 1)) // 128 * 128)
    t = min(cap, hw_padded)
    # Pipeline / megacore floor: aim for >= min_steps grid steps in total.
    steps_per_img = -(-min_steps // max(batch, 1))
    if steps_per_img > 1:
        t = min(t, max(128, (hw // steps_per_img) // 128 * 128))
    return max(128, t)


def attention_block(g, x, params, *, tile_hw=None, vmem_limit_bytes=None):
    """g: (B, F_g, H, W), x: (B, F_l, H, W)  (NCHW, like PyTorch)."""
    B, F_g, H, W = g.shape
    Bx, F_l, Hx, Wx = x.shape
    assert (B, H, W) == (Bx, Hx, Wx)

    wg, bg, wx, bx, wp, bp = params
    F_int = wg.shape[1]
    HW = H * W

    # Free, contiguous views: NCHW -> (B, C, H*W).  No transpose, no pad.
    g3 = g.reshape(B, F_g, HW)
    x3 = x.reshape(B, F_l, HW)

    # 1x1 conv as (F_int, C) @ (C, HW).  Cast conv weights to the activation
    # dtype so bf16 activations keep the MXU in native bf16 mode.
    wgT = wg.T.astype(g.dtype)                               # (F_int, F_g)
    wxT = wx.T.astype(x.dtype)                               # (F_int, F_l)
    b_gx = (bg + bx).reshape(F_int, 1).astype(jnp.float32)   # fused bias
    bp_s = bp.reshape(1).astype(jnp.float32)

    # psi projection weights: MXU row for big F_int, sublane column otherwise.
    if F_int >= 64:
        wp_blk = wp.reshape(1, F_int).astype(jnp.float32)
        wp_spec = pl.BlockSpec((1, F_int), lambda b, j: (0, 0))
    else:
        wp_blk = wp.reshape(F_int, 1).astype(jnp.float32)
        wp_spec = pl.BlockSpec((F_int, 1), lambda b, j: (0, 0))

    budget_bytes, default_vmem_limit = _vmem_budgets()
    if vmem_limit_bytes is None:
        vmem_limit_bytes = default_vmem_limit

    itemsize = jnp.dtype(x.dtype).itemsize
    if tile_hw is None:
        # double-buffered streamed slabs (g, x, out) + f32 intermediate h
        bytes_per_col = 2 * (F_g + 2 * F_l) * itemsize + 2 * F_int * 4
        tile_hw = _pick_tile_hw(HW, B, bytes_per_col, budget_bytes)

    grid = (B, pl.cdiv(HW, tile_hw))

    # Mem-bound custom call: tell XLA's scheduler so it can overlap neighbours.
    cost = pl.CostEstimate(
        flops=2 * (F_g + F_l + 1) * F_int * HW * B,
        transcendentals=HW * B,
        bytes_accessed=(F_g + 2 * F_l) * HW * B * itemsize,
    )

    out = pl.pallas_call(
        _attention_gate_kernel,
        out_shape=jax.ShapeDtypeStruct((B, F_l, HW), x.dtype),
        grid_spec=pltpu.PrefetchScalarGridSpec(
            num_scalar_prefetch=0,
            grid=grid,
            in_specs=[
                # streamed activations: lane-dense spatial tiles, batch squeezed
                pl.BlockSpec((None, F_g, tile_hw), lambda b, j: (b, 0, j)),
                pl.BlockSpec((None, F_l, tile_hw), lambda b, j: (b, 0, j)),
                # small, grid-invariant weight / bias blocks (on a VMEM-tight
                # v7x profile these are the specs to single-buffer via
                # pipeline_mode=pl.Buffered(1))
                pl.BlockSpec((F_int, F_g), lambda b, j: (0, 0)),
                pl.BlockSpec((F_int, F_l), lambda b, j: (0, 0)),
                pl.BlockSpec((F_int, 1), lambda b, j: (0, 0)),
                wp_spec,
                # psi bias: single scalar, keep it in SMEM
                pl.BlockSpec(memory_space=pltpu.MemorySpace.SMEM),
            ],
            out_specs=pl.BlockSpec((None, F_l, tile_hw), lambda b, j: (b, 0, j)),
        ),
        compiler_params=pltpu.CompilerParams(
            dimension_semantics=("parallel", "parallel"),
            vmem_limit_bytes=vmem_limit_bytes,
        ),
        cost_estimate=cost,
    )(g3, x3, wgT, wxT, b_gx, wp_blk, bp_s)

    return out.reshape(B, F_l, H, W)


def init_params(key, F_g, F_l, F_int, eps=1e-5):
    """Deterministic params for the 1x1 convs; BatchNorm (eval mode, default
    init: running_mean=0, running_var=1, gamma=1, beta=0) is folded into the
    conv weight/bias."""
    k = jax.random.split(key, 6)
    s = 1.0 / jnp.sqrt(1.0 + eps)  # BN fold factor at default init

    # conv weights stored as (C_in, C_out), so a 1x1 conv == matmul
    wg = jax.random.normal(k[0], (F_g, F_int), jnp.float32) * 0.1
    bg = jax.random.normal(k[1], (F_int,), jnp.float32) * 0.1
    wx = jax.random.normal(k[2], (F_l, F_int), jnp.float32) * 0.1
    bx = jax.random.normal(k[3], (F_int,), jnp.float32) * 0.1
    wp = jax.random.normal(k[4], (F_int, 1), jnp.float32) * 0.1
    bp = jax.random.normal(k[5], (1,), jnp.float32) * 0.1

    return (wg * s, bg * s, wx * s, bx * s, wp * s, bp * s)


def attention_block_ref(g, x, params):
    """Pure-JAX reference with identical semantics (for verification)."""
    wg, bg, wx, bx, wp, bp = params
    g2 = jnp.transpose(g, (0, 2, 3, 1))
    x2 = jnp.transpose(x, (0, 2, 3, 1))
    g1 = g2 @ wg + bg
    x1 = x2 @ wx + bx
    h = jax.nn.relu(g1 + x1)
    p = jax.nn.sigmoid(h @ wp + bp)          # (B, H, W, 1)
    out = x2 * p
    return jnp.transpose(out, (0, 3, 1, 2))  # back to NCHW


if __name__ == "__main__":
    B, F_g, F_l, F_int, Hs, Ws = 2, 4, 4, 32, 16, 16

    key = jax.random.PRNGKey(0)
    kg, kx, kp = jax.random.split(key, 3)
    g = jax.random.normal(kg, (B, F_g, Hs, Ws), jnp.float32)
    x = jax.random.normal(kx, (B, F_l, Hs, Ws), jnp.float32)
    params = init_params(kp, F_g, F_l, F_int)

    out = attention_block(g, x, params)
    out = jax.block_until_ready(out)

    ref = attention_block_ref(g, x, params)
    assert out.shape == (B, F_l, Hs, Ws)
    # tolerance allows for MXU vs XLA f32 dot rounding differences
    assert jnp.allclose(out, ref, atol=1e-4, rtol=1e-4), (
        float(jnp.max(jnp.abs(out - ref))))

    print("KERNEL_OK")
</pallas_src>

<mosaic_0001>
module attributes {stable_mosaic.version = 11 : i64} {
  func.func @_attention_gate_kernel(%arg0: i32, %arg1: i32, %arg2: memref<1x4x128xf32, #tpu.memory_space<vmem>>, %arg3: memref<1x4x128xf32, #tpu.memory_space<vmem>>, %arg4: memref<32x4xf32, #tpu.memory_space<vmem>>, %arg5: memref<32x4xf32, #tpu.memory_space<vmem>>, %arg6: memref<32x1xf32, #tpu.memory_space<vmem>>, %arg7: memref<32x1xf32, #tpu.memory_space<vmem>>, %arg8: memref<1xf32, #tpu.memory_space<smem>>, %arg9: memref<1x4x128xf32, #tpu.memory_space<vmem>>) attributes {dimension_semantics = [#tpu.dimension_semantics<parallel>, #tpu.dimension_semantics<parallel>], iteration_bounds = array<i64: 2, 2>, scalar_prefetch = 0 : i64, scratch_operands = 0 : i64, tpu.core_type = #tpu.core_type<tc>, window_params = [{transform_indices = @transform_0, window_bounds = array<i64: 1, 4, 128>}, {transform_indices = @transform_1, window_bounds = array<i64: 1, 4, 128>}, {pipeline_mode = #tpu.pipeline_mode<synchronous>, transform_indices = @transform_2, window_bounds = array<i64: 32, 4>}, {pipeline_mode = #tpu.pipeline_mode<synchronous>, transform_indices = @transform_3, window_bounds = array<i64: 32, 4>}, {pipeline_mode = #tpu.pipeline_mode<synchronous>, transform_indices = @transform_4, window_bounds = array<i64: 32, 1>}, {pipeline_mode = #tpu.pipeline_mode<synchronous>, transform_indices = @transform_5, window_bounds = array<i64: 32, 1>}, {transform_indices = @transform_6, window_bounds = array<i64: 1>}, {transform_indices = @transform_7, window_bounds = array<i64: 1, 4, 128>}]} {
    %c0 = arith.constant 0 : index
    %c0_0 = arith.constant 0 : index
    %c0_1 = arith.constant 0 : index
    %0 = vector.load %arg3[%c0, %c0_0, %c0_1] : memref<1x4x128xf32, #tpu.memory_space<vmem>>, vector<1x4x128xf32>
    %1 = vector.shape_cast %0 : vector<1x4x128xf32> to vector<4x128xf32>
    %c0_2 = arith.constant 0 : index
    %c0_3 = arith.constant 0 : index
    %2 = vector.load %arg4[%c0_2, %c0_3] : memref<32x4xf32, #tpu.memory_space<vmem>>, vector<32x4xf32>
    %c0_4 = arith.constant 0 : index
    %c0_5 = arith.constant 0 : index
    %c0_6 = arith.constant 0 : index
    %3 = vector.load %arg2[%c0_4, %c0_5, %c0_6] : memref<1x4x128xf32, #tpu.memory_space<vmem>>, vector<1x4x128xf32>
    %4 = vector.shape_cast %3 : vector<1x4x128xf32> to vector<4x128xf32>
    %cst = arith.constant dense<0.000000e+00> : vector<32x128xf32>
    %5 = tpu.matmul %2, %4, %cst {dimension_numbers = #tpu.dot_dimension_numbers<[1], [0], [0], [1], [0, 0, 1, 1], [], []>} : vector<32x4xf32>, vector<4x128xf32>, vector<32x128xf32> -> vector<32x128xf32>
    %c0_7 = arith.constant 0 : index
    %c0_8 = arith.constant 0 : index
    %6 = vector.load %arg5[%c0_7, %c0_8] : memref<32x4xf32, #tpu.memory_space<vmem>>, vector<32x4xf32>
    %cst_9 = arith.constant dense<0.000000e+00> : vector<32x128xf32>
    %7 = tpu.matmul %6, %1, %cst_9 {dimension_numbers = #tpu.dot_dimension_numbers<[1], [0], [0], [1], [0, 0, 1, 1], [], []>} : vector<32x4xf32>, vector<4x128xf32>, vector<32x128xf32> -> vector<32x128xf32>
    %8 = arith.addf %5, %7 : vector<32x128xf32>
    %c0_10 = arith.constant 0 : index
    %c0_11 = arith.constant 0 : index
    %9 = vector.load %arg6[%c0_10, %c0_11] : memref<32x1xf32, #tpu.memory_space<vmem>>, vector<32x1xf32>
    %10 = vector.broadcast %9 : vector<32x1xf32> to vector<32x128xf32>
    %11 = arith.addf %8, %10 : vector<32x128xf32>
    %cst_12 = arith.constant 0.000000e+00 : f32
    %12 = vector.broadcast %cst_12 : f32 to vector<32x128xf32>
    %13 = arith.maximumf %11, %12 : vector<32x128xf32>
    %c0_13 = arith.constant 0 : index
    %c0_14 = arith.constant 0 : index
    %14 = vector.load %arg7[%c0_13, %c0_14] : memref<32x1xf32, #tpu.memory_space<vmem>>, vector<32x1xf32>
    %15 = vector.broadcast %14 : vector<32x1xf32> to vector<32x128xf32>
    %16 = arith.mulf %13, %15 : vector<32x128xf32>
    %cst_15 = arith.constant dense<0.000000e+00> : vector<128xf32>
    %17 = vector.multi_reduction <add>, %16, %cst_15 [0] : vector<32x128xf32> to vector<128xf32>
    %18 = vector.shape_cast %17 : vector<128xf32> to vector<1x128xf32>
    %c0_16 = arith.constant 0 : index
    %19 = memref.load %arg8[%c0_16] : memref<1xf32, #tpu.memory_space<smem>>
    %20 = vector.broadcast %19 : f32 to vector<1x128xf32>
    %21 = arith.addf %18, %20 : vector<1x128xf32>
    %22 = arith.negf %21 : vector<1x128xf32>
    %23 = math.exp %22 : vector<1x128xf32>
    %cst_17 = arith.constant 1.000000e+00 : f32
    %24 = vector.broadcast %cst_17 : f32 to vector<1x128xf32>
    %25 = arith.addf %24, %23 : vector<1x128xf32>
    %26 = arith.divf %24, %25 : vector<1x128xf32>
    %27 = vector.broadcast %26 : vector<1x128xf32> to vector<4x128xf32>
    %28 = arith.mulf %1, %27 : vector<4x128xf32>
    %c0_18 = arith.constant 0 : index
    %c0_19 = arith.constant 0 : index
    %c0_20 = arith.constant 0 : index
    %29 = vector.load %arg9[%c0_18, %c0_19, %c0_20] : memref<1x4x128xf32, #tpu.memory_space<vmem>>, vector<1x4x128xf32>
    %30 = vector.shape_cast %29 : vector<1x4x128xf32> to vector<4x128xf32>
    %31 = vector.shape_cast %28 : vector<4x128xf32> to vector<1x4x128xf32>
    tpu.vector_store %arg9[%c0_18, %c0_19, %c0_20], %31 {strides = array<i32>} : memref<1x4x128xf32, #tpu.memory_space<vmem>>, vector<1x4x128xf32>,
    return
  }
  func.func @transform_0(%arg0: i32, %arg1: i32) -> (i32, i32, i32) {
    %c0_i32 = arith.constant 0 : i32
    %c0_i32_0 = arith.constant 0 : i32
    return %arg0, %c0_i32, %arg1 : i32, i32, i32
  }
  func.func @transform_1(%arg0: i32, %arg1: i32) -> (i32, i32, i32) {
    %c0_i32 = arith.constant 0 : i32
    %c0_i32_0 = arith.constant 0 : i32
    return %arg0, %c0_i32, %arg1 : i32, i32, i32
  }
  func.func @transform_2(%arg0: i32, %arg1: i32) -> (i32, i32) {
    %c0_i32 = arith.constant 0 : i32
    %c0_i32_0 = arith.constant 0 : i32
    %c0_i32_1 = arith.constant 0 : i32
    return %c0_i32, %c0_i32_0 : i32, i32
  }
  func.func @transform_3(%arg0: i32, %arg1: i32) -> (i32, i32) {
    %c0_i32 = arith.constant 0 : i32
    %c0_i32_0 = arith.constant 0 : i32
    %c0_i32_1 = arith.constant 0 : i32
    return %c0_i32, %c0_i32_0 : i32, i32
  }
  func.func @transform_4(%arg0: i32, %arg1: i32) -> (i32, i32) {
    %c0_i32 = arith.constant 0 : i32
    %c0_i32_0 = arith.constant 0 : i32
    %c0_i32_1 = arith.constant 0 : i32
    return %c0_i32, %c0_i32_0 : i32, i32
  }
  func.func @transform_5(%arg0: i32, %arg1: i32) -> (i32, i32) {
    %c0_i32 = arith.constant 0 : i32
    %c0_i32_0 = arith.constant 0 : i32
    %c0_i32_1 = arith.constant 0 : i32
    return %c0_i32, %c0_i32_0 : i32, i32
  }
  func.func @transform_6(%arg0: i32, %arg1: i32) -> i32 {
    %c0_i32 = arith.constant 0 : i32
    %c0_i32_0 = arith.constant 0 : i32
    return %c0_i32 : i32
  }
  func.func @transform_7(%arg0: i32, %arg1: i32) -> (i32, i32, i32) {
    %c0_i32 = arith.constant 0 : i32
    %c0_i32_0 = arith.constant 0 : i32
    return %arg0, %c0_i32, %arg1 : i32, i32, i32
  }
}

</mosaic_0001>

<bundles_post_ra>
// kernel: tpu_custom_call.1
= control target key start
LH: loop header
LB: loop body
LE: loop exit
PB: predicated region body
PF: predicated region fallthrough
CT: control target
= control target key end

     0   :  { %s1214_s0 = inlined_call_operand.vmem [shape: f32[2,4,256], index: 0, kind: input, shape index: {}]   ;;  %s1215_s1 = inlined_call_operand.vmem [shape: f32[2,4,256], index: 1, kind: input, shape index: {}]   ;;  %s1216_s2 = inlined_call_operand.vmem [shape: f32[32,4], index: 2, kind: input, shape index: {}]   ;;  %s1217_s3 = inlined_call_operand.vmem [shape: f32[32,4], index: 3, kind: input, shape index: {}]   ;;  %s1218_s4 = inlined_call_operand.vmem [shape: f32[32,1], index: 4, kind: input, shape index: {}]   ;;  %s1219_s5 = inlined_call_operand.vmem [shape: f32[32,1], index: 5, kind: input, shape index: {}]   ;;  %s1220_s6 = inlined_call_operand.<no memory space> [shape: f32[1], index: 6, kind: input, shape index: {}]   ;;  %s1221_s7 = inlined_call_operand.hbm [shape: f32[2,4,256], index: 7, kind: output, shape index: {}]  }
   0x1   :  { %12 = sst [smem:[#allocation2]] %s1220_s6 }
   0x2   :  { %13 = vsyncpa [#allocation4], 0 }
   0x3   :  { %15 = vsyncpa [#allocation4 + $0x1], 0  ;;  %s1013_s26 = smov 0   ;;  %s1015_s27 = smov 0  }
   0x4   :  { %s1017_s28 = smov 0   ;;  %s1019_s29 = smov 0  }
   0x5   :  { %s1021_s30 = smov 0   ;;  %s1023_s8 = smov 0  }
   0x6   :  { %s1025_s9 = smov 0   ;;  %s1027_s10 = smov 0  }
   0x7 LB: > { %1226 = sst [smem:[#allocation6_spill]] %s958_s8  ;;  %s738_s6 = sadd.s32 4294967295, %s966_s10   ;;  %s966_s10 = sphi %s1027_s10, %s21_s10   ;;  %s962_s9 = sphi %s1025_s9, %s1235_s9   ;;  %s958_s8 = sphi %s1023_s8, %s1234_s8   ;;  %s954_s30 = sphi %s1021_s30, %s1233_s30   ;;  %s950_s29 = sphi %s1019_s29, %s1232_s29   ;;  %s946_s28 = sphi %s1017_s28, %s1238_s28   ;;  %s942_s27 = sphi %s1015_s27, %s1237_s27   ;;  %s938_s26 = sphi %s1013_s26, %s1236_s26  }
   0x8   : > { %1227 = sst [smem:[#allocation7_spill]] %s962_s9  ;;  %s739_s11 = sadd.s32 4294967294, %s966_s10  }
   0x9   : > { %s30_s12 = sadd.s32 1, %s958_s8  ;;  %s33_s13 = sadd.s32 1, %s962_s9 }
   0xa   : > { %p31_p0 = scmp.ge.s32.totalorder %s30_s12, 2  ;;  %p213_p1 = scmp.ne.s32.totalorder %s946_s28, %s942_s27 }
   0xb   : > { %p214_p2 = scmp.eq.s32.totalorder %s738_s6, 3  ;;  %p219_p5 = scmp.ne.s32.totalorder %s942_s27, %s938_s26 }
   0xc   : > { %s1240_s12 = smov (%p31_p0, %s30_s12), 0  ;;  %s1242_s13 = smov (!%p31_p0, %s33_s13), %s962_s9 }
   0xd   : > { %1228 = sst [smem:[#allocation8_spill]] %s1240_s12  ;;  %s199_s14 = ssub.s32 %s958_s8, %s1240_s12 }
   0xe   : > { %p1064_p3 = por %p214_p2, %p213_p1  ;;  %p35_p4 = scmp.ge.s32.totalorder %s1242_s13, 2 }
   0xf   : > { %p220_p6 = scmp.eq.s32.totalorder %s739_s11, 3  ;;  %p742_p7 = scmp.ge.s32.totalorder %s966_s10, 1 }
  0x10   : > { %s1244_s13 = smov (%p35_p4, %s1242_s13), 0  ;;  %p275_p9 = scmp.lt.s32.totalorder %s966_s10, 5 }
  0x11   : > { %1230 = sst [smem:[#allocation9_spill]] %s1244_s13  ;;  %p1073_p8 = por %p220_p6, %p219_p5 }
  0x12   : > { %s198_s17 = ssub.s32 %s962_s9, %s1244_s13  ;;  %s203_s18 = sadd.s32 1, %s946_s28 }
  0x13   : > { %s200_s19 = sor.u32 %s199_s14, %s198_s17  ;;  %p276_p10 = pnand %p742_p7, %p275_p9 }
  0x14   : > { %p201_p11 = scmp.eq.s32.totalorder %s200_s19, 0  ;;  %p318_p12 = scmp.lt.s32.totalorder (!%p276_p10), %s954_s30, 1  ;;  %v340_v0 = vld [vmem:[%s1217_s3] sm:$0xff] (!%p276_p10)  ;;  %vm344_vm0 = vcmask (!%p276_p10), 31744   ;;  %v968_v2 = vmov (!%p276_p10), 0   ;;  %v548_v4 = vld [vmem:[%s1218_s4 + $0x10] sm:$0xff] (!%p276_p10) }
  0x15   : > { %279 = sbr.rel (%p276_p10) target bundleno = 323 (0x143), region = 48  ;;  %p320_p13 = scmp.lt.s32.totalorder (!%p276_p10), %s950_s29, 1  ;;  %v335_v1 = vld [vmem:[%s1216_s2] sm:$0xff] (!%p276_p10)  ;;  %776 = vmatprep.mubr.msk.f32.mxu1 (!%p276_p10), %vm344_vm0, %v340_v0  ;;  %866 = vset.pattern.permute.xlu0 (!%p276_p10), %v968_v2  ;;  %v547_v5 = vld [vmem:[%s1218_s4 + $0x8] sm:$0xff] (!%p276_p10)  ;;  %v549_v6 = vld [vmem:[%s1218_s4 + $0x18] sm:$0xff] (!%p276_p10)  ;;  %vm357_vm1 = vcmask (!%p276_p10), 1043456  }
  0x16   : > { %s1082_s20 = scalar_select %p201_p11, %s946_s28, %s203_s18  }
  0x17   : > { %784 = vmatprep.mubr.msk.f32.mxu0 (!%p276_p10), %vm344_vm0, %v335_v1  ;;  %867 = vset.pattern.permute.xlu1 (!%p276_p10), %v968_v2  ;;  %v546_v3 = vld [vmem:[%s1218_s4] sm:$0xff] (!%p276_p10)  ;;  %v341_v7 = vld [vmem:[%s1217_s3 + $0x8] sm:$0xff] (!%p276_p10)  ;;  %v342_v11 = vld [vmem:[%s1217_s3 + $0x10] sm:$0xff] (!%p276_p10)  ;;  %s615_s22 = sld [smem:[#allocation2]] (!%p276_p10)  ;;  %s760_s8 = sshll.u32 (!%p276_p10), %s954_s30, 1 }
  0x18   : > { %552 = vperm.xlu0 (!%p276_p10), %866, %v546_v3   ;;  %562 = vperm.xlu1 (!%p276_p10), %867, %v548_v4   ;;  %v336_v10 = vld [vmem:[%s1216_s2 + $0x8] sm:$0xff] (!%p276_p10)  ;;  %v337_v12 = vld [vmem:[%s1216_s2 + $0x10] sm:$0xff] (!%p276_p10)  ;;  %v578_v13 = vld [vmem:[%s1219_s5] sm:$0xff] (!%p276_p10) }
  0x19   : > { %v579_v14 = vld [vmem:[%s1219_s5 + $0x8] sm:$0xff] (!%p276_p10)  ;;  %v343_v15 = vld [vmem:[%s1217_s3 + $0x18] sm:$0xff] (!%p276_p10)  ;;  %v580_v17 = vld [vmem:[%s1219_s5 + $0x10] sm:$0xff] (!%p276_p10) }
  0x1a   : > { %v338_v16 = vld [vmem:[%s1216_s2 + $0x18] sm:$0xff] (!%p276_p10) }
  0x1b   : > { %v581_v18 = vld [vmem:[%s1219_s5 + $0x18] sm:$0xff] (!%p276_p10) }
  0x1c   : > { %s319_s25 = scalar_select %p318_p12, %s954_s30, 1  ;;  %557 = vperm.xlu0 %866, %v547_v5   ;;  %567 = vperm.xlu1 %867, %v549_v6  }
  0x1d   : > { %s321_s6 = scalar_select %p320_p13, %s950_s29, 1  ;;  %v616_v59 = vstv %s615_s22 }
  0x1e   : > { %s744_s19 = sshll.u32 %s319_s25, 1 }
  0x1f   : > { %s323_s21 = sadd.s32 %s744_s19, %s321_s6 }
  0x20   : > { %s745_s12 = sshll.u32 %s323_s21, 2  ;;  %584 = vperm.xlu0 %866, %v578_v13   ;;  %589 = vperm.xlu1 %867, %v579_v14  }
  0x21   : > { %s333_s9 = scalar_lea.vmem %s1215_s1, %s745_s12  ;;  %s325_s25 = scalar_lea.vmem %s1214_s0, %s745_s12 }
  0x22   : > { %v1117_v8 = vld [vmem:[%s333_s9] sm:$0xf]  ;;  %s315_s12 = sand.u32 1, %s942_s27   ;;  %s638_s9 = sadd.s32 %s950_s29, %s760_s8 }
  0x23   : > { %v339_v9 = vld [vmem:[%s325_s25] sm:$0xf]  ;;  %774 = vmatprep.subr.msk.mxu1 %vm357_vm1, %v1117_v8  ;;  %s743_s23 = sshll.u32 %s315_s12, 2  ;;  %s761_s24 = sshll.u32 %s638_s9, 6 }
  0x24   : > { %782 = vmatprep.subr.msk.mxu0 %vm357_vm1, %v339_v9  ;;  %775 = vmatpush3.msk.msra.mxu1 %vm357_vm1, %v1117_v8  ;;  %s317_s11 = scalar_lea.vmem [#allocation3], %s743_s23  ;;  %s1161_s25 = scalar_lea.hbm %s1221_s7, %s761_s24 }
  0x25   : > { %783 = vmatpush3.msk.msra.mxu0 %vm357_vm1, %v339_v9  ;;  %777 = vmatmul.mubr.msk.f32.vlgmr.msra.gmra.mrb[0].mxu1 %vm344_vm0, %v341_v7  ;;  %s642_s14 = sshll.u32 %s317_s11, 4  ;;  %s627_s6 = scalar_lea.sflag [#allocation4], %s315_s12  ;;  %s1163_s14 = int_to_ptr.vmem [resolvable:$true] %s642_s14 }
  0x26   : > { %785 = vmatmul.mubr.msk.f32.vlgmr.msra.gmra.mrb[0].mxu0 %vm344_vm0, %v336_v10  ;;  %779 = vmatprep.mubr.msk.f32.mxu1 %vm344_vm0, %v342_v11  ;;  %s872_s30 = scalar_lea.vmem %s1163_s14, 64  ;;  %s969_s29 = smov [#allocation3]  }
  0x27   : > { %787 = vmatprep.mubr.msk.f32.mxu0 %vm344_vm0, %v337_v12  ;;  %594 = vperm.xlu0 %866, %v580_v17   ;;  %p873_p0 = scmp.ne.s32.totalorder %s1163_s14, %s872_s30  ;;  %s876_s19 = sshll.u32 %s969_s29, 4  ;;  %s877_s19 = int_to_ptr.vmem [resolvable:$false] %s876_s19 }
  0x28   : > { %599 = vperm.xlu1 %867, %v581_v18   ;;  %s878_s13 = scalar_lea.vmem %s877_s19, 128  ;;  %p879_p4 = scmp.lt.s32.totalorder %s1163_s14, %s877_s19 }
  0x29   : > { %780 = vmatmul.mubr.msk.f32.gmra.mrb[2].mxu1 %vm344_vm0, %v343_v15  ;;  %p874_p1 = pnand %p873_p0, %p1064_p3  ;;  %p880_p5 = scmp.lt.s32.totalorder %s878_s13, %s872_s30 }
  0x2a   : > { %788 = vmatmul.mubr.msk.f32.gmra.mrb[2].mxu0 %vm344_vm0, %v338_v16 }
  0x2b   : > { %p875_p2 = pneg %p874_p1  ;;  %p881_p6 = por %p880_p5, %p879_p4 }
  0x2d   : > { %p882_p7 = pnand %p881_p6, %p875_p2 }
  0x97   : > { %v553_v19 = vpop.permute.xlu0 %552  ;;  %v563_v20 = vpop.permute.xlu1 %562 }
  0x9b   : > { %v558_v21 = vpop.permute.xlu0 %557  ;;  %v568_v22 = vpop.permute.xlu1 %567 }
  0x9f   : > { %v585_v29 = vpop.permute.xlu0 %584  ;;  %v590_v38 = vpop.permute.xlu1 %589 }
  0xa6   : > { %v595_v48 = vpop.permute.xlu0 %594 }
  0xa7   : > { %v600_v50 = vpop.permute.xlu1 %599 }
  0xf8   : > { %v778_v23 = vpop.f32.mrb[0].mxu1 }
  0xf9   : > { %v786_v24 = vpop.f32.mrb[0].mxu0  ;;  %v427_v26 = vpop.f32.mrb[1].mxu1 }
  0xfa   : > { %v533_v25 = vadd.f32 %v786_v24, %v778_v23  ;;  %v527_v27 = vpop.f32.mrb[1].mxu0 }
  0xfb   : > { %v528_v28 = vadd.f32 %v527_v27, %v427_v26 }
  0xfc   : > { %v571_v30 = vadd.f32 %v558_v21, %v533_v25  ;;  %v781_v32 = vpop.f32.mrb[2].mxu1 }
  0xfd   : > { %v570_v31 = vadd.f32 %v553_v19, %v528_v28  ;;  %v789_v33 = vpop.f32.mrb[2].mxu0  ;;  %v437_v36 = vpop.f32.mrb[3].mxu1 }
  0xfe   : > { %v575_v34 = vmax.f32 %v571_v30, 0.0  ;;  %v543_v35 = vadd.f32 %v789_v33, %v781_v32  ;;  %v537_v37 = vpop.f32.mrb[3].mxu0 }
  0xff   : > { %v574_v39 = vmax.f32 %v570_v31, 0.0  ;;  %v538_v40 = vadd.f32 %v537_v37, %v437_v36 }
 0x100   : > { %v603_v41 = vmul.f32 %v590_v38, %v575_v34  ;;  %v573_v42 = vadd.f32 %v568_v22, %v543_v35 }
 0x101   : > { %v602_v43 = vmul.f32 %v585_v29, %v574_v39  ;;  %v572_v44 = vadd.f32 %v563_v20, %v538_v40 }
 0x102   : > { %v577_v46 = vmax.f32 %v573_v42, 0.0 }
 0x103   : > { %v606_v45 = vadd.f32 %v603_v41, %v602_v43  ;;  %v576_v47 = vmax.f32 %v572_v44, 0.0 }
 0x104   : > { %v605_v51 = vmul.f32 %v600_v50, %v577_v46 }
 0x105   : > { %v604_v49 = vmul.f32 %v595_v48, %v576_v47 }
 0x107   : > { %v607_v52 = vadd.f32 %v606_v45, %v604_v49 }
 0x109   : > { %v608_v53 = vadd.f32 %v607_v52, %v605_v51 }
 0x10b   : > { %v609_v54 = vrot.slane %v608_v53, 4 }
 0x10d   : > { %v610_v55 = vadd.f32 %v609_v54, %v608_v53 }
 0x10f   : > { %v611_v56 = vrot.slane %v610_v55, 2 }
 0x111   : > { %v612_v57 = vadd.f32 %v611_v56, %v610_v55 }
 0x113   : > { %v613_v58 = vrot.slane %v612_v57, 1 }
 0x115   : > { %v614_v60 = vadd.f32 %v613_v58, %v612_v57 }
 0x117   : > { %v617_v61 = vadd.f32 %v616_v59, %v614_v60 }
 0x119   : > { %v758_v62 = vmul.f32 -1.442695, %v617_v61 }
 0x11b   : > { %868 = vpow2.f32 %v758_v62 }
 0x125   : > { %v869_v63 = vpop.eup %868 }
 0x126   : > { %v621_v0 = vadd.f32 1.0, %v869_v63 }
 0x128   : > { %870 = vrcp.f32 %v621_v0 }
 0x132   : > { %v871_v1 = vpop.eup %870 }
 0x133   : > { %v624_v2 = vmul.f32 %v871_v1, %v1117_v8 }
 0x135   : > { %625 = vst [vmem:[%s317_s11] sm:$0xf] %v624_v2 }
 0x136   : > { %885 = shalt.err (!%p882_p7)
}
 0x137   : > { %s886_s21 = scalar_lea.hbm %s1161_s25, 64  ;;  %s890_s23 = scalar_lea.hbm %s1221_s7, 256 }
 0x138   : > { %p887_p9 = scmp.ne.s32.totalorder %s1161_s25, %s886_s21  ;;  %p891_p12 = scmp.lt.u32.totalorder %s1161_s25, %s1221_s7 }
 0x139   : > { %p892_p13 = scmp.lt.u32.totalorder %s890_s23, %s886_s21  ;;  %p894_p1 = scmp.lt.u32.totalorder %s886_s21, %s1161_s25 }
 0x13a   : > { %p888_p10 = pnand %p887_p9, %p1064_p3 }
 0x13b   : > { %p893_p0 = por %p892_p13, %p891_p12 }
 0x13c   : > { %p889_p11 = pneg %p888_p10 }
 0x13d   : > { %p895_p2 = por %p894_p1, %p893_p0 }
 0x13f   : > { %p896_p4 = pnand %p895_p2, %p889_p11 }
 0x141   : > { %899 = shalt.err (!%p896_p4)
}
 0x142   : > { %794 = dma.vmem_to_hbm [thread:$0]  (%p1064_p3), %s1163_s14, 64, %s1161_s25, %s627_s6  }
 0x143 PF: > { %p800_p5 = scmp.ge.s32.totalorder %s966_s10, 2  ;;  %s654_s24 = sand.u32 1, %s938_s26  }
 0x144   : > { %s655_s11 = scalar_lea.sflag [#allocation4], %s654_s24 }
 0x145   : > { %p797_p6 = pnand %p800_p5, %p1073_p8 }
 0x147   : > { %933 = dma.done.wait (!%p797_p6), %s655_s11, 64  }
 0x148   : > { %935 = vsyncadd (!%p797_p6), %s655_s11, 4294967232  ;;  %s21_s10 = sadd.s32 1, %s966_s10   ;;  %s1232_s29 = sld [smem:[#allocation6_spill]] }
 0x149   : > { %p18_p7 = scmp.ge.s32.totalorder %s21_s10, 6   ;;  %s1233_s30 = sld [smem:[#allocation7_spill]] }
 0x14a   : > { %s1234_s8 = sld [smem:[#allocation8_spill]]  ;;  %s1235_s9 = sld [smem:[#allocation9_spill]] }
 0x14b   : > { %s1236_s26 = smov %s942_s27  ;;  %s1237_s27 = smov %s946_s28 }
 0x14c   : > { %s1238_s28 = smov %s1082_s20  ;;  %20 = sbr.rel (!%p18_p7) target bundleno = 7 (0x7), region = 86 }
 0x153   :  { %660 = vsyncpa [#allocation4], 1 }
 0x154   :  { %662 = vsyncpa [#allocation4 + $0x1], 1 }

</bundles_post_ra>
